<compile_context>
chip_gen: v6e
topology: v6e:2x2x1
jax: 0.10.0
libtpu: 0.0.40
codegen_flags: <defaults>
</compile_context>

<pallas_src>
import jax
import jax.numpy as jnp
from jax import lax
from jax.experimental import pallas as pl
from jax.experimental.pallas import tpu as pltpu


def _round_up(n, m):
    return ((n + m - 1) // m) * m


def _mlp_kernel(x_ref,
                w1_ref, b1_ref,
                w2_ref, b2_ref,
                w3_ref, b3_ref,
                w4_ref, b4_ref,
                o_ref):
    """Fused 4-layer MLP on one (blk, D) batch tile -> lane-dense (1, blk) output."""
    # Cast the activation stream to bf16 in-kernel (VPU cast, no extra HBM traffic),
    # so every matmul hits the bf16-native MXU; bias + ReLU stay in f32.
    x = x_ref[...].astype(jnp.bfloat16)

    h = jnp.dot(x, w1_ref[...], preferred_element_type=jnp.float32)
    h = jnp.maximum(h + b1_ref[...], 0.0)

    h = jnp.dot(h.astype(jnp.bfloat16), w2_ref[...], preferred_element_type=jnp.float32)
    h = jnp.maximum(h + b2_ref[...], 0.0)

    h = jnp.dot(h.astype(jnp.bfloat16), w3_ref[...], preferred_element_type=jnp.float32)
    h = jnp.maximum(h + b3_ref[...], 0.0)

    # Layer 4 (Linear(32, 1)): M=1 / N=blk / K=32 matmul lands the result already
    # lane-major as (1, blk) -- no XLU lane-reduce or sublane->lane transpose needed.
    y = lax.dot_general(w4_ref[...], h.astype(jnp.bfloat16),
                        dimension_numbers=(((1,), (1,)), ((), ())),
                        preferred_element_type=jnp.float32)
    o_ref[...] = (y + b4_ref[...]).astype(o_ref.dtype)


def my_model_forward(x, params, *, block_b=4096):
    """x: (B, input_dim) float32 -> (B,) float32 (matches torch forward + squeeze(1))."""
    (w1, b1), (w2, b2), (w3, b3), (w4, b4) = params
    B, D = x.shape

    # Tile selection:
    #   * B <= 256: single full-array block (block shapes == array shapes -> always legal;
    #     the sub-128-lane masked store is irrelevant at this size).
    #   * B  > 256: 256-aligned tiles (MXU-M aligned on v6e/v7x, 128-aligned for v5e),
    #     capped at `block_b` (4096 keeps per-step VMEM ~8 MiB) and at ceil(B/2) so there
    #     are always >= 2 grid steps for the two v7x TensorCores.  The ragged last block
    #     is handled by Pallas edge clipping, so no O(B*D) jnp.pad copy of x is needed.
    if B <= 256:
        blk = B
    else:
        blk = min(block_b, _round_up(pl.cdiv(B, 2), 256))
    num_blocks = pl.cdiv(B, blk)

    # Weights feed the bf16-native MXU; they are tiny and resident across the grid.
    w1b = w1.astype(jnp.bfloat16)
    w2b = w2.astype(jnp.bfloat16)
    w3b = w3.astype(jnp.bfloat16)
    w4_row = w4.T.astype(jnp.bfloat16)   # (1, 32) row for the M=1 final matmul

    full = lambda arr: pl.BlockSpec(arr.shape, lambda i: (0, 0))

    out = pl.pallas_call(
        _mlp_kernel,
        out_shape=jax.ShapeDtypeStruct((1, B), jnp.float32),
        grid_spec=pltpu.PrefetchScalarGridSpec(
            num_scalar_prefetch=0,
            grid=(num_blocks,),
            in_specs=[
                pl.BlockSpec((blk, D), lambda i: (i, 0)),     # x tile: batch on sublanes
                full(w1b), full(b1),
                full(w2b), full(b2),
                full(w3b), full(b3),
                full(w4_row), full(b4),
            ],
            out_specs=pl.BlockSpec((1, blk), lambda i: (0, i)),  # batch on lanes (lane-dense)
        ),
        compiler_params=pltpu.CompilerParams(
            dimension_semantics=("parallel",),
            vmem_limit_bytes=32 * 1024 * 1024,  # headroom for blk=4096 on v5e (16 MiB default)
        ),
    )(x, w1b, b1, w2b, b2, w3b, b3, w4_row, b4)

    return out[0, :]   # (B,) -- equivalent to torch squeeze(1)


def init_params(key, input_dim):
    """Deterministic init mimicking nn.Linear defaults (uniform +/- 1/sqrt(fan_in)).

    Weights are stored as (in_features, out_features) so the kernel computes
    h = x @ W + b (same math as PyTorch's x @ W.T + b with W stored (out, in)).
    """
    dims = [(input_dim, 128), (128, 64), (64, 32), (32, 1)]
    params = []
    for (fan_in, fan_out) in dims:
        key, kw, kb = jax.random.split(key, 3)
        bound = 1.0 / jnp.sqrt(float(fan_in))
        w = jax.random.uniform(kw, (fan_in, fan_out), jnp.float32, -bound, bound)
        b = jax.random.uniform(kb, (1, fan_out), jnp.float32, -bound, bound)
        params.append((w, b))
    return params


def _reference_forward_f32(x, params):
    h = x
    for i, (w, b) in enumerate(params):
        h = h @ w + b
        if i < len(params) - 1:
            h = jnp.maximum(h, 0.0)
    return h[:, 0]


def _reference_forward_bf16(x, params):
    # Same mixed precision as the kernel: bf16 MXU inputs, f32 accumulation/bias/ReLU.
    h = x
    for i, (w, b) in enumerate(params):
        h = jnp.dot(h.astype(jnp.bfloat16), w.astype(jnp.bfloat16),
                    preferred_element_type=jnp.float32) + b
        if i < len(params) - 1:
            h = jnp.maximum(h, 0.0)
    return h[:, 0]


if __name__ == "__main__":
    input_dim = 32
    key = jax.random.PRNGKey(0)
    key, kp = jax.random.split(key)
    params = init_params(kp, input_dim)

    # batch=300: 2 ragged grid steps (256 + 44, exercises edge clipping + v7x 2-block path)
    # batch=37 : single full-array block path (B <= 256)
    for batch in (300, 37):
        key, kx = jax.random.split(key)
        x = jax.random.normal(kx, (batch, input_dim), jnp.float32)

        y = jax.block_until_ready(my_model_forward(x, params))
        assert y.shape == (batch,), f"bad output shape {y.shape}"

        y_bf = _reference_forward_bf16(x, params)   # matches kernel's mixed precision
        y_f32 = _reference_forward_f32(x, params)   # pure-f32 semantic reference
        assert jnp.allclose(y, y_bf, atol=1e-3, rtol=1e-3), "mismatch vs bf16-matched reference"
        assert jnp.allclose(y, y_f32, atol=5e-2, rtol=5e-2), "mismatch vs f32 reference"

    print("KERNEL_OK")
</pallas_src>

<mosaic_0001>
module attributes {stable_mosaic.version = 11 : i64} {
  func.func @_mlp_kernel(%arg0: i32, %arg1: memref<256x32xf32, #tpu.memory_space<vmem>>, %arg2: memref<32x128xbf16, #tpu.memory_space<vmem>>, %arg3: memref<1x128xf32, #tpu.memory_space<vmem>>, %arg4: memref<128x64xbf16, #tpu.memory_space<vmem>>, %arg5: memref<1x64xf32, #tpu.memory_space<vmem>>, %arg6: memref<64x32xbf16, #tpu.memory_space<vmem>>, %arg7: memref<1x32xf32, #tpu.memory_space<vmem>>, %arg8: memref<1x32xbf16, #tpu.memory_space<vmem>>, %arg9: memref<1x1xf32, #tpu.memory_space<vmem>>, %arg10: memref<1x256xf32, #tpu.memory_space<vmem>>) attributes {dimension_semantics = [#tpu.dimension_semantics<parallel>], iteration_bounds = array<i64: 2>, scalar_prefetch = 0 : i64, scratch_operands = 0 : i64, tpu.core_type = #tpu.core_type<tc>, window_params = [{transform_indices = @transform_0, window_bounds = array<i64: 256, 32>}, {pipeline_mode = #tpu.pipeline_mode<synchronous>, transform_indices = @transform_1, window_bounds = array<i64: 32, 128>}, {pipeline_mode = #tpu.pipeline_mode<synchronous>, transform_indices = @transform_2, window_bounds = array<i64: 1, 128>}, {pipeline_mode = #tpu.pipeline_mode<synchronous>, transform_indices = @transform_3, window_bounds = array<i64: 128, 64>}, {pipeline_mode = #tpu.pipeline_mode<synchronous>, transform_indices = @transform_4, window_bounds = array<i64: 1, 64>}, {pipeline_mode = #tpu.pipeline_mode<synchronous>, transform_indices = @transform_5, window_bounds = array<i64: 64, 32>}, {pipeline_mode = #tpu.pipeline_mode<synchronous>, transform_indices = @transform_6, window_bounds = array<i64: 1, 32>}, {pipeline_mode = #tpu.pipeline_mode<synchronous>, transform_indices = @transform_7, window_bounds = array<i64: 1, 32>}, {pipeline_mode = #tpu.pipeline_mode<synchronous>, transform_indices = @transform_8, window_bounds = array<i64: 1, 1>}, {transform_indices = @transform_9, window_bounds = array<i64: 1, 256>}]} {
    %c0 = arith.constant 0 : index
    %c0_0 = arith.constant 0 : index
    %0 = vector.load %arg1[%c0, %c0_0] : memref<256x32xf32, #tpu.memory_space<vmem>>, vector<256x32xf32>
    %1 = arith.truncf %0 : vector<256x32xf32> to vector<256x32xbf16>
    %c0_1 = arith.constant 0 : index
    %c0_2 = arith.constant 0 : index
    %2 = vector.load %arg2[%c0_1, %c0_2] : memref<32x128xbf16, #tpu.memory_space<vmem>>, vector<32x128xbf16>
    %cst = arith.constant dense<0.000000e+00> : vector<256x128xf32>
    %3 = tpu.matmul %1, %2, %cst {dimension_numbers = #tpu.dot_dimension_numbers<[1], [0], [0], [1], [0, 0, 1, 1], [], []>} : vector<256x32xbf16>, vector<32x128xbf16>, vector<256x128xf32> -> vector<256x128xf32>
    %c0_3 = arith.constant 0 : index
    %c0_4 = arith.constant 0 : index
    %4 = vector.load %arg3[%c0_3, %c0_4] : memref<1x128xf32, #tpu.memory_space<vmem>>, vector<1x128xf32>
    %5 = vector.broadcast %4 : vector<1x128xf32> to vector<256x128xf32>
    %6 = arith.addf %3, %5 : vector<256x128xf32>
    %cst_5 = arith.constant 0.000000e+00 : f32
    %7 = vector.broadcast %cst_5 : f32 to vector<256x128xf32>
    %8 = arith.maximumf %6, %7 : vector<256x128xf32>
    %9 = arith.truncf %8 : vector<256x128xf32> to vector<256x128xbf16>
    %c0_6 = arith.constant 0 : index
    %c0_7 = arith.constant 0 : index
    %10 = vector.load %arg4[%c0_6, %c0_7] : memref<128x64xbf16, #tpu.memory_space<vmem>>, vector<128x64xbf16>
    %cst_8 = arith.constant dense<0.000000e+00> : vector<256x64xf32>
    %11 = tpu.matmul %9, %10, %cst_8 {dimension_numbers = #tpu.dot_dimension_numbers<[1], [0], [0], [1], [0, 0, 1, 1], [], []>} : vector<256x128xbf16>, vector<128x64xbf16>, vector<256x64xf32> -> vector<256x64xf32>
    %c0_9 = arith.constant 0 : index
    %c0_10 = arith.constant 0 : index
    %12 = vector.load %arg5[%c0_9, %c0_10] : memref<1x64xf32, #tpu.memory_space<vmem>>, vector<1x64xf32>
    %13 = vector.broadcast %12 : vector<1x64xf32> to vector<256x64xf32>
    %14 = arith.addf %11, %13 : vector<256x64xf32>
    %cst_11 = arith.constant 0.000000e+00 : f32
    %15 = vector.broadcast %cst_11 : f32 to vector<256x64xf32>
    %16 = arith.maximumf %14, %15 : vector<256x64xf32>
    %17 = arith.truncf %16 : vector<256x64xf32> to vector<256x64xbf16>
    %c0_12 = arith.constant 0 : index
    %c0_13 = arith.constant 0 : index
    %18 = vector.load %arg6[%c0_12, %c0_13] : memref<64x32xbf16, #tpu.memory_space<vmem>>, vector<64x32xbf16>
    %cst_14 = arith.constant dense<0.000000e+00> : vector<256x32xf32>
    %19 = tpu.matmul %17, %18, %cst_14 {dimension_numbers = #tpu.dot_dimension_numbers<[1], [0], [0], [1], [0, 0, 1, 1], [], []>} : vector<256x64xbf16>, vector<64x32xbf16>, vector<256x32xf32> -> vector<256x32xf32>
    %c0_15 = arith.constant 0 : index
    %c0_16 = arith.constant 0 : index
    %20 = vector.load %arg7[%c0_15, %c0_16] : memref<1x32xf32, #tpu.memory_space<vmem>>, vector<1x32xf32>
    %21 = vector.broadcast %20 : vector<1x32xf32> to vector<256x32xf32>
    %22 = arith.addf %19, %21 : vector<256x32xf32>
    %cst_17 = arith.constant 0.000000e+00 : f32
    %23 = vector.broadcast %cst_17 : f32 to vector<256x32xf32>
    %24 = arith.maximumf %22, %23 : vector<256x32xf32>
    %c0_18 = arith.constant 0 : index
    %c0_19 = arith.constant 0 : index
    %25 = vector.load %arg8[%c0_18, %c0_19] : memref<1x32xbf16, #tpu.memory_space<vmem>>, vector<1x32xbf16>
    %26 = arith.truncf %24 : vector<256x32xf32> to vector<256x32xbf16>
    %cst_20 = arith.constant dense<0.000000e+00> : vector<1x256xf32>
    %27 = tpu.matmul %25, %26, %cst_20 {dimension_numbers = #tpu.dot_dimension_numbers<[1], [1], [0], [0], [0, 0, 1, 0], [], []>} : vector<1x32xbf16>, vector<256x32xbf16>, vector<1x256xf32> -> vector<1x256xf32>
    %c0_21 = arith.constant 0 : index
    %c0_22 = arith.constant 0 : index
    %28 = vector.load %arg9[%c0_21, %c0_22] : memref<1x1xf32, #tpu.memory_space<vmem>>, vector<1x1xf32>
    %29 = vector.broadcast %28 : vector<1x1xf32> to vector<1x256xf32>
    %30 = arith.addf %27, %29 : vector<1x256xf32>
    %c0_23 = arith.constant 0 : index
    %c0_24 = arith.constant 0 : index
    %31 = vector.load %arg10[%c0_23, %c0_24] : memref<1x256xf32, #tpu.memory_space<vmem>>, vector<1x256xf32>
    tpu.vector_store %arg10[%c0_23, %c0_24], %30 {strides = array<i32>} : memref<1x256xf32, #tpu.memory_space<vmem>>, vector<1x256xf32>,
    return
  }
  func.func @transform_0(%arg0: i32) -> (i32, i32) {
    %c0_i32 = arith.constant 0 : i32
    %c0_i32_0 = arith.constant 0 : i32
    return %arg0, %c0_i32 : i32, i32
  }
  func.func @transform_1(%arg0: i32) -> (i32, i32) {
    %c0_i32 = arith.constant 0 : i32
    %c0_i32_0 = arith.constant 0 : i32
    %c0_i32_1 = arith.constant 0 : i32
    return %c0_i32, %c0_i32_0 : i32, i32
  }
  func.func @transform_2(%arg0: i32) -> (i32, i32) {
    %c0_i32 = arith.constant 0 : i32
    %c0_i32_0 = arith.constant 0 : i32
    %c0_i32_1 = arith.constant 0 : i32
    return %c0_i32, %c0_i32_0 : i32, i32
  }
  func.func @transform_3(%arg0: i32) -> (i32, i32) {
    %c0_i32 = arith.constant 0 : i32
    %c0_i32_0 = arith.constant 0 : i32
    %c0_i32_1 = arith.constant 0 : i32
    return %c0_i32, %c0_i32_0 : i32, i32
  }
  func.func @transform_4(%arg0: i32) -> (i32, i32) {
    %c0_i32 = arith.constant 0 : i32
    %c0_i32_0 = arith.constant 0 : i32
    %c0_i32_1 = arith.constant 0 : i32
    return %c0_i32, %c0_i32_0 : i32, i32
  }
  func.func @transform_5(%arg0: i32) -> (i32, i32) {
    %c0_i32 = arith.constant 0 : i32
    %c0_i32_0 = arith.constant 0 : i32
    %c0_i32_1 = arith.constant 0 : i32
    return %c0_i32, %c0_i32_0 : i32, i32
  }
  func.func @transform_6(%arg0: i32) -> (i32, i32) {
    %c0_i32 = arith.constant 0 : i32
    %c0_i32_0 = arith.constant 0 : i32
    %c0_i32_1 = arith.constant 0 : i32
    return %c0_i32, %c0_i32_0 : i32, i32
  }
  func.func @transform_7(%arg0: i32) -> (i32, i32) {
    %c0_i32 = arith.constant 0 : i32
    %c0_i32_0 = arith.constant 0 : i32
    %c0_i32_1 = arith.constant 0 : i32
    return %c0_i32, %c0_i32_0 : i32, i32
  }
  func.func @transform_8(%arg0: i32) -> (i32, i32) {
    %c0_i32 = arith.constant 0 : i32
    %c0_i32_0 = arith.constant 0 : i32
    %c0_i32_1 = arith.constant 0 : i32
    return %c0_i32, %c0_i32_0 : i32, i32
  }
  func.func @transform_9(%arg0: i32) -> (i32, i32) {
    %c0_i32 = arith.constant 0 : i32
    %c0_i32_0 = arith.constant 0 : i32
    return %c0_i32, %arg0 : i32, i32
  }
}

</mosaic_0001>

<bundles_post_ra>
// kernel: tpu_custom_call.1
= control target key start
LH: loop header
LB: loop body
LE: loop exit
PB: predicated region body
PF: predicated region fallthrough
CT: control target
= control target key end

     0   :  { %s2325_s0 = inlined_call_operand.vmem [shape: f32[300,32], index: 0, kind: input, shape index: {}]   ;;  %s2326_s1 = inlined_call_operand.vmem [shape: bf16[32,128], index: 1, kind: input, shape index: {}]   ;;  %s2327_s2 = inlined_call_operand.vmem [shape: f32[1,128], index: 2, kind: input, shape index: {}]   ;;  %s2328_s3 = inlined_call_operand.vmem [shape: bf16[128,64], index: 3, kind: input, shape index: {}]   ;;  %s2329_s4 = inlined_call_operand.vmem [shape: f32[1,64], index: 4, kind: input, shape index: {}]   ;;  %s2330_s5 = inlined_call_operand.vmem [shape: bf16[64,32], index: 5, kind: input, shape index: {}]   ;;  %s2331_s6 = inlined_call_operand.vmem [shape: f32[1,32], index: 6, kind: input, shape index: {}]   ;;  %s2332_s7 = inlined_call_operand.vmem [shape: bf16[1,32], index: 7, kind: input, shape index: {}]   ;;  %s2333_s8 = inlined_call_operand.<no memory space> [shape: f32[1,1], index: 8, kind: input, shape index: {}]   ;;  %s2334_s9 = inlined_call_operand.hbm [shape: f32[1,300], index: 9, kind: output, shape index: {}]  }
   0x1   :  { %v14_v0 = vstv %s2333_s8 }
   0x2   :  { %15 = vst [vmem:[#allocation2] sm:$0x1] %v14_v0 }
   0x3   :  { %16 = vsyncpa [#allocation4], 0 }
   0x4   :  { %18 = vsyncpa [#allocation4 + $0x1], 0  ;;  %s1926_s11 = smov 0   ;;  %s1928_s12 = smov 0  }
   0x5   :  { %s1930_s13 = smov 0   ;;  %s1932_s14 = smov 0  }
   0x6 LB: > { %s1947_s8 = sadd.s32 4294967295, %s1868_s14   ;;  %s1472_s15 = sadd.s32 4294967294, %s1868_s14   ;;  %s1868_s14 = sphi %s1932_s14, %s2340_s14   ;;  %s1864_s13 = sphi %s1930_s13, %s2339_s13   ;;  %s1860_s12 = sphi %s1928_s12, %s2338_s12   ;;  %s1856_s11 = sphi %s1926_s11, %s2337_s11  }
   0x7   : > { %s1951_s16 = sadd.s32 1, %s1868_s14   ;;  %s225_s17 = sadd.s32 1, %s1864_s13 }
   0x8   : > { %s222_s18 = ssub.s32 %s1868_s14, %s1951_s16  ;;  %p235_p0 = scmp.ne.s32.totalorder %s1864_s13, %s1860_s12 }
   0x9   : > { %p223_p1 = scmp.eq.s32.totalorder %s222_s18, 0  ;;  %p236_p2 = scmp.eq.s32.totalorder %s1947_s8, 1 }
   0xa   : > { %p241_p3 = scmp.ne.s32.totalorder %s1860_s12, %s1856_s11  ;;  %p242_p4 = scmp.eq.s32.totalorder %s1472_s15, 1 }
   0xb   : > { %s1962_s19 = scalar_select %p223_p1, %s1864_s13, %s225_s17  }
   0xc   : > { %p1964_p5 = por %p236_p2, %p235_p0  ;;  %p1968_p6 = por %p242_p4, %p241_p3 }
   0xd   : > { %p1475_p7 = scmp.ge.s32.totalorder %s1868_s14, 1  ;;  %p301_p8 = scmp.lt.s32.totalorder %s1868_s14, 3 }
   0xf   : > { %p302_p9 = pnand %p1475_p7, %p301_p8 }
  0x10   : > { %s1978_s24 = sshll.u32 (!%p302_p9), %s1947_s8, 5  ;;  %s338_s28 = sand.u32 (!%p302_p9), 1, %s1860_s12  }
  0x11   : > { %305 = sbr.rel (%p302_p9) target bundleno = 996 (0x3e4), region = 56  ;;  %p346_p10 = scmp.lt.s32.totalorder (!%p302_p9), %s1978_s24, 37 }
  0x12   : > { %s1476_s29 = sshll.u32 (!%p302_p9), %s338_s28, 1  ;;  %s2278_s10 = scalar_lea.sflag (!%p302_p9), [#allocation4], %s338_s28 }
  0x16   : > { %v1794_v1 = vld [vmem:[%s2326_s1 + $0x8] sm:$0xff]   ;;  %v1795_v2 = vld [vmem:[%s2326_s1] sm:$0xff]   ;;  %s347_s27 = scalar_select %p346_p10, %s1978_s24, 37  ;;  %v1796_v3 = vld [vmem:[%s2328_s3 + $0x38] sm:$0xff]   ;;  %vm432_vm0 = vcmask 261120   ;;  %vm1009_vm1 = vcmask 523264  }
  0x17   : > { %1617 = vmatprep.subr.bf16.mxu0 %v1794_v1  ;;  %1741 = vmatprep.subr.bf16.mxu1 %v1794_v1  ;;  %v1797_v25 = vld [vmem:[%s2328_s3 + $0x30] sm:$0xff]   ;;  %v1798_v31 = vld [vmem:[%s2328_s3 + $0x28] sm:$0xff]   ;;  %v1799_v40 = vld [vmem:[%s2328_s3 + $0x20] sm:$0xff]   ;;  %s1530_s15 = sshll.u32 (%p1964_p5), %s1947_s8, 1 }
  0x18   : > { %1618 = vmatpush3.bf16.msra.mxu0 %v1794_v1  ;;  %1743 = vmatpush3.bf16.msra.mxu1 %v1794_v1  ;;  %s1478_s30 = sshll.u32 %s347_s27, 3  ;;  %v1800_v47 = vld [vmem:[%s2328_s3 + $0x18] sm:$0xff]   ;;  %v1801_v56 = vld [vmem:[%s2328_s3 + $0x10] sm:$0xff]   ;;  %v1802_v57 = vld [vmem:[%s2328_s3 + $0x8] sm:$0xff]   ;;  %s1402_s18 = ssub.s32 (%p1964_p5), 3, %s1530_s15 }
  0x19   : > { %1619 = vmatprep.subr.bf16.mxu0 %v1795_v2  ;;  %1742 = vmatprep.subr.bf16.mxu1 %v1795_v2  ;;  %s1991_s17 = scalar_lea.vmem %s2325_s0, %s1478_s30  ;;  %v1803_v58 = vld [vmem:[%s2328_s3] sm:$0xff]   ;;  %v1804_v59 = vld [vmem:[%s2330_s5 + $0x18] sm:$0xff]   ;;  %v1805_v60 = vld [vmem:[%s2330_s5 + $0x10] sm:$0xff]   ;;  %s340_s30 = scalar_lea.vmem [#allocation3], %s1476_s29 }
  0x1a   : > { %v361_v4 = vld [vmem:[%s1991_s17] sm:$0xff]  ;;  %v362_v5 = vld [vmem:[%s1991_s17 + $0x8] sm:$0xff]  ;;  %v363_v6 = vld [vmem:[%s1991_s17 + $0x10] sm:$0xff]  ;;  %p1403_p11 = scmp.lt.s32.totalorder (%p1964_p5), %s1402_s18, 2 }
  0x1b   : > { %v393_v7 = vpack.c.bf16 %v362_v5, %v361_v4  ;;  %v364_v8 = vld [vmem:[%s1991_s17 + $0x18] sm:$0xff]  ;;  %v365_v9 = vld [vmem:[%s1991_s17 + $0x20] sm:$0xff]  ;;  %v366_v10 = vld [vmem:[%s1991_s17 + $0x28] sm:$0xff] }
  0x1c   : > { %1620 = vmatpush3.bf16.msra.mxu0 %v1795_v2  ;;  %1744 = vmatpush3.bf16.msra.mxu1 %v1795_v2  ;;  %v394_v11 = vpack.c.bf16 %v364_v8, %v363_v6  ;;  %v395_v12 = vpack.c.bf16 %v366_v10, %v365_v9  ;;  %v367_v13 = vld [vmem:[%s1991_s17 + $0x30] sm:$0xff]  ;;  %v368_v14 = vld [vmem:[%s1991_s17 + $0x38] sm:$0xff]  ;;  %v369_v15 = vld [vmem:[%s1991_s17 + $0x40] sm:$0xff] }
  0x1d   : > { %1653 = vmatprep.subr.bf16.mxu1 %v1796_v3  ;;  %1621 = vmatprep.mubr.msk.bf16.mxu0 %vm432_vm0, %v393_v7  ;;  %v370_v16 = vld [vmem:[%s1991_s17 + $0x48] sm:$0xff]  ;;  %v377_v17 = vld [vmem:[%s1991_s17 + $0x80] sm:$0xff]  ;;  %v379_v20 = vld [vmem:[%s1991_s17 + $0x90] sm:$0xff]  ;;  %v396_v26 = vpack.c.bf16 %v368_v14, %v367_v13 }
  0x1e   : > { %v378_v18 = vld [vmem:[%s1991_s17 + $0x88] sm:$0xff]  ;;  %v380_v21 = vld [vmem:[%s1991_s17 + $0x98] sm:$0xff]  ;;  %v381_v22 = vld [vmem:[%s1991_s17 + $0xa0] sm:$0xff]  ;;  %v397_v28 = vpack.c.bf16 %v370_v16, %v369_v15  ;;  %1701 = vmatprep.subr.bf16.mxu0 %v1804_v59 }
  0x1f   : > { %1622 = vmatmul.mubr.msk.bf16.vlgmr.msra.gmra.mxu0 %vm432_vm0, %v394_v11  ;;  %v401_v19 = vpack.c.bf16 %v378_v18, %v377_v17  ;;  %v402_v23 = vpack.c.bf16 %v380_v21, %v379_v20  ;;  %v382_v24 = vld [vmem:[%s1991_s17 + $0xa8] sm:$0xff]  ;;  %v383_v29 = vld [vmem:[%s1991_s17 + $0xb0] sm:$0xff]  ;;  %v384_v30 = vld [vmem:[%s1991_s17 + $0xb8] sm:$0xff] }
  0x20   : > { %1625 = vmatprep.mubr.msk.bf16.mxu0 %vm432_vm0, %v395_v12  ;;  %v403_v27 = vpack.c.bf16 %v382_v24, %v381_v22  ;;  %v385_v32 = vld [vmem:[%s1991_s17 + $0xc0] sm:$0xff]  ;;  %v386_v33 = vld [vmem:[%s1991_s17 + $0xc8] sm:$0xff]  ;;  %v371_v34 = vld [vmem:[%s1991_s17 + $0x50] sm:$0xff]  ;;  %v404_v38 = vpack.c.bf16 %v384_v30, %v383_v29  ;;  %1702 = vmatpush3.bf16.msra.mxu0 %v1804_v59 }
  0x21   : > { %1637 = vmatprep.mubr.msk.bf16.mxu1 %vm432_vm0, %v401_v19  ;;  %v372_v35 = vld [vmem:[%s1991_s17 + $0x58] sm:$0xff]  ;;  %v373_v36 = vld [vmem:[%s1991_s17 + $0x60] sm:$0xff]  ;;  %v374_v37 = vld [vmem:[%s1991_s17 + $0x68] sm:$0xff]  ;;  %v405_v39 = vpack.c.bf16 %v386_v33, %v385_v32  ;;  %1703 = vmatprep.subr.bf16.mxu0 %v1805_v60 }
  0x22   : > { %1638 = vmatmul.mubr.msk.bf16.vlgmr.msra.gmra.mxu1 %vm432_vm0, %v402_v23  ;;  %v398_v41 = vpack.c.bf16 %v372_v35, %v371_v34  ;;  %v399_v42 = vpack.c.bf16 %v374_v37, %v373_v36  ;;  %v387_v43 = vld [vmem:[%s1991_s17 + $0xd0] sm:$0xff]  ;;  %v388_v44 = vld [vmem:[%s1991_s17 + $0xd8] sm:$0xff]  ;;  %v389_v45 = vld [vmem:[%s1991_s17 + $0xe0] sm:$0xff] }
  0x23   : > { %1641 = vmatprep.mubr.msk.bf16.mxu1 %vm432_vm0, %v403_v27  ;;  %1654 = vmatpush3.bf16.msra.mxu1 %v1796_v3  ;;  %v390_v46 = vld [vmem:[%s1991_s17 + $0xe8] sm:$0xff]  ;;  %v375_v48 = vld [vmem:[%s1991_s17 + $0x70] sm:$0xff]  ;;  %v376_v49 = vld [vmem:[%s1991_s17 + $0x78] sm:$0xff]  ;;  %v406_v50 = vpack.c.bf16 %v388_v44, %v387_v43 }
  0x24   : > { %1655 = vmatprep.subr.bf16.mxu1 %v1797_v25  ;;  %v407_v51 = vpack.c.bf16 %v390_v46, %v389_v45  ;;  %v400_v52 = vpack.c.bf16 %v376_v49, %v375_v48  ;;  %v391_v53 = vld [vmem:[%s1991_s17 + $0xf0] sm:$0xff]  ;;  %v392_v54 = vld [vmem:[%s1991_s17 + $0xf8] sm:$0xff]  ;;  %v1806_v61 = vld [vmem:[%s2330_s5 + $0x8] sm:$0xff]   ;;  %1704 = vmatpush3.bf16.msra.mxu0 %v1805_v60 }
  0x25   : > { %v408_v55 = vpack.c.bf16 %v392_v54, %v391_v53  ;;  %1705 = vmatprep.subr.bf16.mxu0 %v1806_v61  ;;  %v2074_v0 = vld [vmem:[%s2327_s2] ss:$0 sm:$0xff] }
  0x27   : > { %1626 = vmatmul.mubr.msk.bf16.gmra.mxu0 %vm432_vm0, %v396_v26  ;;  %1656 = vmatpush3.bf16.msra.mxu1 %v1797_v25 }
  0x28   : > { %1629 = vmatprep.mubr.msk.bf16.mxu0 %vm432_vm0, %v397_v28  ;;  %1657 = vmatprep.subr.bf16.mxu1 %v1798_v31 }
  0x29   : > { %1706 = vmatpush3.bf16.msra.mxu0 %v1806_v61 }
  0x2a   : > { %1642 = vmatmul.mubr.msk.bf16.gmra.mxu1 %vm432_vm0, %v404_v38 }
  0x2b   : > { %1645 = vmatprep.mubr.msk.bf16.mxu1 %vm432_vm0, %v405_v39  ;;  %1658 = vmatpush3.bf16.msra.mxu1 %v1798_v31 }
  0x2c   : > { %1659 = vmatprep.subr.bf16.mxu1 %v1799_v40 }
  0x2f   : > { %1630 = vmatmul.mubr.msk.bf16.gmra.mxu0 %vm432_vm0, %v398_v41  ;;  %1660 = vmatpush3.bf16.msra.mxu1 %v1799_v40 }
  0x30   : > { %1633 = vmatprep.mubr.msk.bf16.mxu0 %vm432_vm0, %v399_v42  ;;  %1661 = vmatprep.subr.bf16.mxu1 %v1800_v47 }
  0x32   : > { %1646 = vmatmul.mubr.msk.bf16.gmra.mxu1 %vm432_vm0, %v406_v50 }
  0x33   : > { %1649 = vmatprep.mubr.msk.bf16.mxu1 %vm432_vm0, %v407_v51  ;;  %1662 = vmatpush3.bf16.msra.mxu1 %v1800_v47 }
  0x34   : > { %1663 = vmatprep.subr.bf16.mxu1 %v1801_v56 }
  0x37   : > { %1634 = vmatmul.mubr.msk.bf16.gmra.mxu0 %vm432_vm0, %v400_v52  ;;  %1664 = vmatpush3.bf16.msra.mxu1 %v1801_v56 }
  0x38   : > { %1665 = vmatprep.subr.bf16.mxu1 %v1802_v57 }
  0x3a   : > { %1650 = vmatmul.mubr.msk.bf16.gmra.mxu1 %vm432_vm0, %v408_v55 }
  0x3b   : > { %1666 = vmatpush3.bf16.msra.mxu1 %v1802_v57 }
  0x3c   : > { %1667 = vmatprep.subr.bf16.mxu1 %v1803_v58 }
  0x3f   : > { %1668 = vmatpush3.bf16.msra.mxu1 %v1803_v58 }
  0xdf   : > { %v1623_v62 = vpop.f32.mrf.mxu0 }
  0xe0   : > { %v524_v5 = vadd.f32 %v1623_v62, %v2074_v0 }
  0xe1   : > { %v515_v63 = vpop.f32.mrf.mxu0 }
  0xe2   : > { %v516_v2 = vadd.f32 %v2074_v0, %v515_v63  ;;  %v2078_v4 = vpop.f32.mrf.mxu1  ;;  %v644_v14 = vmax.f32 %v524_v5, 0.0 }
  0xe3   : > { %v1624_v1 = vpop.f32.mrf.mxu0 }
  0xe4   : > { %v527_v3 = vadd.f32 %v1624_v1, %v2074_v0  ;;  %v579_v8 = vpop.f32.mrf.mxu1  ;;  %v642_v11 = vmax.f32 %v516_v2, 0.0 }
  0xe5   : > { %v518_v6 = vpop.f32.mrf.mxu0  ;;  %v580_v52 = vadd.f32 %v2074_v0, %v579_v8 }
  0xe6   : > { %v519_v7 = vadd.f32 %v2074_v0, %v518_v6  ;;  %v645_v9 = vmax.f32 %v527_v3, 0.0  ;;  %v2082_v13 = vpop.f32.mrf.mxu1 }
  0xe7   : > { %v1627_v10 = vpop.f32.mrf.mxu0  ;;  %v658_v61 = vmax.f32 %v580_v52, 0.0 }
  0xe8   : > { %v643_v12 = vmax.f32 %v519_v7, 0.0  ;;  %v582_v17 = vpop.f32.mrf.mxu1  ;;  %v675_v18 = vpack.c.bf16 %v645_v9, %v644_v14  ;;  %v540_v23 = vadd.f32 %v1627_v10, %v2074_v0  ;;  %v591_v14 = vadd.f32 %v2082_v13, %v2074_v0 }
  0xe9   : > { %v531_v15 = vpop.f32.mrf.mxu0  ;;  %v583_v53 = vadd.f32 %v2074_v0, %v582_v17 }
  0xea   : > { %v674_v16 = vpack.c.bf16 %v643_v12, %v642_v11  ;;  %v532_v20 = vadd.f32 %v2074_v0, %v531_v15  ;;  %v2086_v22 = vpop.f32.mrf.mxu1  ;;  %v648_v32 = vmax.f32 %v540_v23, 0.0  ;;  %v588_v11 = vadd.f32 %v2078_v4, %v2074_v0 }
  0xeb   : > { %v1628_v19 = vpop.f32.mrf.mxu0  ;;  %v659_v63 = vmax.f32 %v583_v53, 0.0  ;;  %v604_v4 = vadd.f32 %v2086_v22, %v2074_v0 }
  0xec   : > { %v543_v21 = vadd.f32 %v1628_v19, %v2074_v0  ;;  %1669 = vmatprep.mubr.bf16.mxu1 %v674_v16  ;;  %v595_v26 = vpop.f32.mrf.mxu1  ;;  %v646_v29 = vmax.f32 %v532_v20, 0.0  ;;  %v661_v19 = vmax.f32 %v591_v14, 0.0 }
  0xed   : > { %v534_v24 = vpop.f32.mrf.mxu0  ;;  %1670 = vmatmul.mubr.bf16.vlgmr.msra.gmra.mxu1 %v675_v18  ;;  %v682_v8 = vpack.c.bf16 %v659_v63, %v658_v61  ;;  %v596_v9 = vadd.f32 %v2074_v0, %v595_v26  ;;  %v660_v18 = vmax.f32 %v588_v11, 0.0 }
  0xee   : > { %v535_v25 = vadd.f32 %v2074_v0, %v534_v24  ;;  %v649_v27 = vmax.f32 %v543_v21, 0.0  ;;  %v2090_v31 = vpop.f32.mrf.mxu1 }
  0xef   : > { %v1631_v28 = vpop.f32.mrf.mxu0  ;;  %v662_v16 = vmax.f32 %v596_v9, 0.0  ;;  %v607_v13 = vadd.f32 %v2090_v31, %v2074_v0 }
  0xf0   : > { %v647_v30 = vmax.f32 %v535_v25, 0.0  ;;  %v598_v35 = vpop.f32.mrf.mxu1  ;;  %v677_v36 = vpack.c.bf16 %v649_v27, %v648_v32  ;;  %v556_v41 = vadd.f32 %v1631_v28, %v2074_v0  ;;  %v683_v25 = vpack.c.bf16 %v661_v19, %v660_v18 }
  0xf1   : > { %v547_v33 = vpop.f32.mrf.mxu0  ;;  %v599_v10 = vadd.f32 %v2074_v0, %v598_v35 }
  0xf2   : > { %v676_v34 = vpack.c.bf16 %v647_v30, %v646_v29  ;;  %v548_v38 = vadd.f32 %v2074_v0, %v547_v33  ;;  %v2094_v40 = vpop.f32.mrf.mxu1  ;;  %v652_v49 = vmax.f32 %v556_v41, 0.0  ;;  %v664_v29 = vmax.f32 %v604_v4, 0.0 }
  0xf3   : > { %v1632_v37 = vpop.f32.mrf.mxu0  ;;  %v663_v17 = vmax.f32 %v599_v10, 0.0  ;;  %v665_v30 = vmax.f32 %v607_v13, 0.0  ;;  %v620_v22 = vadd.f32 %v2094_v40, %v2074_v0  ;;  %v1807_v40 = vld [vmem:[%s2330_s5] sm:$0xff]  }
  0xf4   : > { %v559_v39 = vadd.f32 %v1632_v37, %v2074_v0  ;;  %1673 = vmatprep.mubr.bf16.mxu1 %v676_v34  ;;  %v611_v46 = vpop.f32.mrf.mxu1  ;;  %v650_v47 = vmax.f32 %v548_v38, 0.0  ;;  %1707 = vmatprep.subr.bf16.mxu0 %v1807_v40 }
  0xf5   : > { %v550_v42 = vpop.f32.mrf.mxu0  ;;  %1674 = vmatmul.mubr.bf16.gmra.mxu1 %v677_v36  ;;  %v684_v21 = vpack.c.bf16 %v663_v17, %v662_v16  ;;  %v612_v23 = vadd.f32 %v2074_v0, %v611_v46  ;;  %v685_v36 = vpack.c.bf16 %v665_v30, %v664_v29  ;;  %1708 = vmatpush3.bf16.msra.mxu0 %v1807_v40 }
  0xf6   : > { %v551_v43 = vadd.f32 %v2074_v0, %v550_v42  ;;  %v653_v44 = vmax.f32 %v559_v39, 0.0  ;;  %v1648_v56 = vpop.f32.mrf.mxu1  ;;  %v668_v39 = vmax.f32 %v620_v22, 0.0 }
  0xf7   : > { %v1635_v45 = vpop.f32.mrf.mxu0  ;;  %v666_v27 = vmax.f32 %v612_v23, 0.0  ;;  %v623_v37 = vadd.f32 %v1648_v56, %v2074_v0 }
  0xf8   : > { %v651_v48 = vmax.f32 %v551_v43, 0.0  ;;  %v679_v54 = vpack.c.bf16 %v653_v44, %v652_v49  ;;  %v572_v59 = vadd.f32 %v1635_v45, %v2074_v0  ;;  %v614_v2 = vpop.f32.mrf.mxu1 }
  0xf9   : > { %v563_v50 = vpop.f32.mrf.mxu0  ;;  %v615_v24 = vadd.f32 %v2074_v0, %v614_v2  ;;  %v669_v41 = vmax.f32 %v623_v37, 0.0 }
  0xfa   : > { %v678_v51 = vpack.c.bf16 %v651_v48, %v650_v47  ;;  %v564_v57 = vadd.f32 %v2074_v0, %v563_v50  ;;  %v656_v6 = vmax.f32 %v572_v59, 0.0  ;;  %v1651_v15 = vpop.f32.mrf.mxu1 }
  0xfb   : > { %v1636_v55 = vpop.f32.mrf.mxu0  ;;  %v667_v28 = vmax.f32 %v615_v24, 0.0  ;;  %v687_v43 = vpack.c.bf16 %v669_v41, %v668_v39  ;;  %v636_v44 = vadd.f32 %v1651_v15, %v2074_v0 }
  0xfc   : > { %v575_v58 = vadd.f32 %v1636_v55, %v2074_v0  ;;  %1677 = vmatprep.mubr.bf16.mxu1 %v678_v51  ;;  %v654_v3 = vmax.f32 %v564_v57, 0.0  ;;  %v627_v20 = vpop.f32.mrf.mxu1  ;;  %v2129_v51 = vld [vmem:[%s2329_s4] ss:$0 sm:$0xff] }
  0xfd   : > { %v566_v60 = vpop.f32.mrf.mxu0  ;;  %1678 = vmatmul.mubr.bf16.gmra.mxu1 %v679_v54  ;;  %v686_v33 = vpack.c.bf16 %v667_v28, %v666_v27  ;;  %v628_v34 = vadd.f32 %v2074_v0, %v627_v20  ;;  %v672_v46 = vmax.f32 %v636_v44, 0.0 }
  0xfe   : > { %v567_v62 = vadd.f32 %v2074_v0, %v566_v60  ;;  %v657_v1 = vmax.f32 %v575_v58, 0.0  ;;  %v1652_v26 = vpop.f32.mrf.mxu1 }
  0xff   : > { %v670_v31 = vmax.f32 %v628_v34, 0.0  ;;  %v639_v45 = vadd.f32 %v1652_v26, %v2074_v0 }
 0x100   : > { %v655_v5 = vmax.f32 %v567_v62, 0.0  ;;  %v681_v12 = vpack.c.bf16 %v657_v1, %v656_v6  ;;  %v630_v32 = vpop.f32.mrf.mxu1 }
 0x101   : > { %v631_v35 = vadd.f32 %v2074_v0, %v630_v32  ;;  %v673_v47 = vmax.f32 %v639_v45, 0.0 }
 0x102   : > { %v680_v7 = vpack.c.bf16 %v655_v5, %v654_v3 }
 0x103   : > { %v671_v38 = vmax.f32 %v631_v35, 0.0  ;;  %v689_v48 = vpack.c.bf16 %v673_v47, %v672_v46 }
 0x104   : > { %1681 = vmatprep.mubr.bf16.mxu1 %v680_v7 }
 0x105   : > { %1682 = vmatmul.mubr.bf16.gmra.mxu1 %v681_v12  ;;  %v688_v42 = vpack.c.bf16 %v671_v38, %v670_v31 }
 0x106   : > { %1685 = vmatprep.mubr.bf16.mxu1 %v682_v8 }
 0x10d   : > { %1686 = vmatmul.mubr.bf16.gmra.mxu1 %v683_v25 }
 0x10e   : > { %1689 = vmatprep.mubr.bf16.mxu1 %v684_v21 }
 0x115   : > { %1690 = vmatmul.mubr.bf16.gmra.mxu1 %v685_v36 }
 0x116   : > { %1693 = vmatprep.mubr.bf16.mxu1 %v686_v33 }
 0x11d   : > { %1694 = vmatmul.mubr.bf16.gmra.mxu1 %v687_v43 }
 0x11e   : > { %1697 = vmatprep.mubr.bf16.mxu1 %v688_v42 }
 0x125   : > { %1698 = vmatmul.mubr.bf16.gmra.mxu1 %v689_v48 }
 0x1ad   : > { %v1671_v49 = vpop.f32.mrf.mxu1 }
 0x1ae   : > { %v804_v54 = vadd.f32 %v1671_v49, %v2129_v51 }
 0x1af   : > { %v795_v50 = vpop.f32.mrf.mxu1 }
 0x1b0   : > { %v796_v52 = vadd.f32 %v2129_v51, %v795_v50  ;;  %v924_v61 = vmax.f32 %v804_v54, 0.0 }
 0x1b1   : > { %v1672_v0 = vpop.f32.mrf.mxu1 }
 0x1b2   : > { %v807_v53 = vadd.f32 %v1672_v0, %v2129_v51  ;;  %v922_v59 = vmax.f32 %v796_v52, 0.0 }
 0x1b3   : > { %v798_v55 = vpop.f32.mrf.mxu1 }
 0x1b4   : > { %v799_v56 = vadd.f32 %v2129_v51, %v798_v55  ;;  %v925_v57 = vmax.f32 %v807_v53, 0.0 }
 0x1b5   : > { %v1675_v58 = vpop.f32.mrf.mxu1 }
 0x1b6   : > { %v923_v60 = vmax.f32 %v799_v56, 0.0  ;;  %v955_v1 = vpack.c.bf16 %v925_v57, %v924_v61  ;;  %v820_v6 = vadd.f32 %v1675_v58, %v2129_v51 }
 0x1b7   : > { %v811_v62 = vpop.f32.mrf.mxu1 }
 0x1b8   : > { %v954_v63 = vpack.c.bf16 %v923_v60, %v922_v59  ;;  %v812_v3 = vadd.f32 %v2129_v51, %v811_v62  ;;  %v928_v14 = vmax.f32 %v820_v6, 0.0 }
 0x1b9   : > { %v1676_v2 = vpop.f32.mrf.mxu1 }
 0x1ba   : > { %v823_v5 = vadd.f32 %v1676_v2, %v2129_v51  ;;  %1709 = vmatprep.mubr.msk.bf16.mxu0 %vm1009_vm1, %v954_v63  ;;  %v926_v11 = vmax.f32 %v812_v3, 0.0 }
 0x1bb   : > { %v814_v7 = vpop.f32.mrf.mxu1  ;;  %1710 = vmatmul.mubr.msk.bf16.vlgmr.msra.gmra.mxu0 %vm1009_vm1, %v955_v1 }
 0x1bc   : > { %v815_v8 = vadd.f32 %v2129_v51, %v814_v7  ;;  %v929_v9 = vmax.f32 %v823_v5, 0.0 }
 0x1bd   : > { %v1679_v10 = vpop.f32.mrf.mxu1 }
 0x1be   : > { %v927_v12 = vmax.f32 %v815_v8, 0.0  ;;  %v957_v17 = vpack.c.bf16 %v929_v9, %v928_v14  ;;  %v836_v21 = vadd.f32 %v1679_v10, %v2129_v51 }
 0x1bf   : > { %v827_v15 = vpop.f32.mrf.mxu1 }
 0x1c0   : > { %v956_v16 = vpack.c.bf16 %v927_v12, %v926_v11  ;;  %v828_v19 = vadd.f32 %v2129_v51, %v827_v15  ;;  %v932_v27 = vmax.f32 %v836_v21, 0.0 }
 0x1c1   : > { %v1680_v18 = vpop.f32.mrf.mxu1 }
 0x1c2   : > { %v839_v20 = vadd.f32 %v1680_v18, %v2129_v51  ;;  %1713 = vmatprep.mubr.msk.bf16.mxu0 %vm1009_vm1, %v956_v16  ;;  %v930_v13 = vmax.f32 %v828_v19, 0.0 }
 0x1c3   : > { %v830_v23 = vpop.f32.mrf.mxu1  ;;  %1714 = vmatmul.mubr.msk.bf16.gmra.mxu0 %vm1009_vm1, %v957_v17 }
 0x1c4   : > { %v831_v24 = vadd.f32 %v2129_v51, %v830_v23  ;;  %v933_v25 = vmax.f32 %v839_v20, 0.0 }
 0x1c5   : > { %v1683_v4 = vpop.f32.mrf.mxu1 }
 0x1c6   : > { %v931_v26 = vmax.f32 %v831_v24, 0.0  ;;  %v959_v30 = vpack.c.bf16 %v933_v25, %v932_v27  ;;  %v852_v35 = vadd.f32 %v1683_v4, %v2129_v51 }
 0x1c7   : > { %v843_v28 = vpop.f32.mrf.mxu1 }
 0x1c8   : > { %v958_v29 = vpack.c.bf16 %v931_v26, %v930_v13  ;;  %v844_v33 = vadd.f32 %v2129_v51, %v843_v28  ;;  %v936_v41 = vmax.f32 %v852_v35, 0.0 }
 0x1c9   : > { %v1684_v32 = vpop.f32.mrf.mxu1 }
 0x1ca   : > { %v855_v34 = vadd.f32 %v1684_v32, %v2129_v51  ;;  %1717 = vmatprep.mubr.msk.bf16.mxu0 %vm1009_vm1, %v958_v29  ;;  %v934_v38 = vmax.f32 %v844_v33, 0.0 }
 0x1cb   : > { %v846_v36 = vpop.f32.mrf.mxu1  ;;  %1718 = vmatmul.mubr.msk.bf16.gmra.mxu0 %vm1009_vm1, %v959_v30 }
 0x1cc   : > { %v847_v22 = vadd.f32 %v2129_v51, %v846_v36  ;;  %v937_v37 = vmax.f32 %v855_v34, 0.0 }
 0x1cd   : > { %v1687_v31 = vpop.f32.mrf.mxu1 }
 0x1ce   : > { %v935_v39 = vmax.f32 %v847_v22, 0.0  ;;  %v961_v44 = vpack.c.bf16 %v937_v37, %v936_v41  ;;  %v868_v48 = vadd.f32 %v1687_v31, %v2129_v51  ;;  %v2182_v22 = vld [vmem:[%s2332_s7] sm:$0x1] }
 0x1cf   : > { %v859_v42 = vpop.f32.mrf.mxu1  ;;  %1615 = vmatprep.mubr.msk.bf16.mxu1 %vm432_vm0, %v2182_v22 }
 0x1d0   : > { %v960_v43 = vpack.c.bf16 %v935_v39, %v934_v38  ;;  %v860_v46 = vadd.f32 %v2129_v51, %v859_v42  ;;  %v940_v54 = vmax.f32 %v868_v48, 0.0  ;;  %v1268_v39 = vld [vmem:[#allocation2] sm:$0x1]  ;;  %v1870_v42 = vmov 0  }
 0x1d1   : > { %v1688_v45 = vpop.f32.mrf.mxu1  ;;  %1793 = vset.pattern.permute.xlu0 %v1870_v42 }
 0x1d2   : > { %v871_v47 = vadd.f32 %v1688_v45, %v2129_v51  ;;  %1721 = vmatprep.mubr.msk.bf16.mxu0 %vm1009_vm1, %v960_v43  ;;  %v938_v52 = vmax.f32 %v860_v46, 0.0  ;;  %1271 = vperm.xlu0 %1793, %v1268_v39  }
 0x1d3   : > { %v862_v40 = vpop.f32.mrf.mxu1  ;;  %1722 = vmatmul.mubr.msk.bf16.gmra.mxu0 %vm1009_vm1, %v961_v44 }
 0x1d4   : > { %v863_v49 = vadd.f32 %v2129_v51, %v862_v40  ;;  %v941_v50 = vmax.f32 %v871_v47, 0.0 }
 0x1d5   : > { %v1691_v0 = vpop.f32.mrf.mxu1 }
 0x1d6   : > { %v939_v53 = vmax.f32 %v863_v49, 0.0  ;;  %v963_v57 = vpack.c.bf16 %v941_v50, %v940_v54  ;;  %v884_v61 = vadd.f32 %v1691_v0, %v2129_v51 }
 0x1d7   : > { %v875_v55 = vpop.f32.mrf.mxu1 }
 0x1d8   : > { %v962_v56 = vpack.c.bf16 %v939_v53, %v938_v52  ;;  %v876_v59 = vadd.f32 %v2129_v51, %v875_v55  ;;  %v944_v6 = vmax.f32 %v884_v61, 0.0 }
 0x1d9   : > { %v1692_v58 = vpop.f32.mrf.mxu1 }
 0x1da   : > { %v887_v60 = vadd.f32 %v1692_v58, %v2129_v51  ;;  %1725 = vmatprep.mubr.msk.bf16.mxu0 %vm1009_vm1, %v962_v56  ;;  %v942_v3 = vmax.f32 %v876_v59, 0.0 }
 0x1db   : > { %v878_v62 = vpop.f32.mrf.mxu1  ;;  %1726 = vmatmul.mubr.msk.bf16.gmra.mxu0 %vm1009_vm1, %v963_v57 }
 0x1dc   : > { %v879_v63 = vadd.f32 %v2129_v51, %v878_v62  ;;  %v945_v1 = vmax.f32 %v887_v60, 0.0 }
 0x1dd   : > { %v1695_v2 = vpop.f32.mrf.mxu1 }
 0x1de   : > { %v943_v5 = vmax.f32 %v879_v63, 0.0  ;;  %v965_v9 = vpack.c.bf16 %v945_v1, %v944_v6  ;;  %v900_v14 = vadd.f32 %v1695_v2, %v2129_v51 }
 0x1df   : > { %v891_v7 = vpop.f32.mrf.mxu1 }
 0x1e0   : > { %v964_v8 = vpack.c.bf16 %v943_v5, %v942_v3  ;;  %v892_v11 = vadd.f32 %v2129_v51, %v891_v7  ;;  %v948_v21 = vmax.f32 %v900_v14, 0.0 }
 0x1e1   : > { %v1696_v10 = vpop.f32.mrf.mxu1 }
 0x1e2   : > { %v903_v12 = vadd.f32 %v1696_v10, %v2129_v51  ;;  %1729 = vmatprep.mubr.msk.bf16.mxu0 %vm1009_vm1, %v964_v8  ;;  %v946_v19 = vmax.f32 %v892_v11, 0.0 }
 0x1e3   : > { %v894_v15 = vpop.f32.mrf.mxu1  ;;  %1730 = vmatmul.mubr.msk.bf16.gmra.mxu0 %vm1009_vm1, %v965_v9 }
 0x1e4   : > { %v895_v16 = vadd.f32 %v2129_v51, %v894_v15  ;;  %v949_v17 = vmax.f32 %v903_v12, 0.0 }
 0x1e5   : > { %v1699_v18 = vpop.f32.mrf.mxu1 }
 0x1e6   : > { %v947_v20 = vmax.f32 %v895_v16, 0.0  ;;  %v967_v25 = vpack.c.bf16 %v949_v17, %v948_v21  ;;  %v916_v27 = vadd.f32 %v1699_v18, %v2129_v51 }
 0x1e7   : > { %v907_v23 = vpop.f32.mrf.mxu1 }
 0x1e8   : > { %v966_v24 = vpack.c.bf16 %v947_v20, %v946_v19  ;;  %v908_v13 = vadd.f32 %v2129_v51, %v907_v23  ;;  %v952_v34 = vmax.f32 %v916_v27, 0.0 }
 0x1e9   : > { %v1700_v4 = vpop.f32.mrf.mxu1 }
 0x1ea   : > { %v919_v26 = vadd.f32 %v1700_v4, %v2129_v51  ;;  %1733 = vmatprep.mubr.msk.bf16.mxu0 %vm1009_vm1, %v966_v24  ;;  %v950_v32 = vmax.f32 %v908_v13, 0.0 }
 0x1eb   : > { %v910_v28 = vpop.f32.mrf.mxu1  ;;  %1734 = vmatmul.mubr.msk.bf16.gmra.mxu0 %vm1009_vm1, %v967_v25 }
 0x1ec   : > { %v911_v29 = vadd.f32 %v2129_v51, %v910_v28  ;;  %v953_v30 = vmax.f32 %v919_v26, 0.0  ;;  %v2189_v51 = vld [vmem:[%s2331_s6] ss:$0 sm:$0xff] }
 0x1ee   : > { %v951_v33 = vmax.f32 %v911_v29, 0.0  ;;  %v969_v36 = vpack.c.bf16 %v953_v30, %v952_v34 }
 0x1f0   : > { %v968_v35 = vpack.c.bf16 %v951_v33, %v950_v32 }
 0x1f2   : > { %1737 = vmatprep.mubr.msk.bf16.mxu0 %vm1009_vm1, %v968_v35 }
 0x1f3   : > { %1738 = vmatmul.mubr.msk.bf16.gmra.mxu0 %vm1009_vm1, %v969_v36 }
 0x27b   : > { %v1711_v37 = vpop.f32.mrf.mxu0 }
 0x27c   : > { %v1101_v38 = vadd.f32 %v1711_v37, %v2189_v51 }
 0x27d   : > { %v1092_v31 = vpop.f32.mrf.mxu0 }
 0x27e   : > { %v1093_v43 = vadd.f32 %v2189_v51, %v1092_v31  ;;  %v1221_v46 = vmax.f32 %v1101_v38, 0.0 }
 0x27f   : > { %v1712_v41 = vpop.f32.mrf.mxu0 }
 0x280   : > { %v1104_v44 = vadd.f32 %v1712_v41, %v2189_v51  ;;  %v1219_v49 = vmax.f32 %v1093_v43, 0.0 }
 0x281   : > { %v1095_v45 = vpop.f32.mrf.mxu0 }
 0x282   : > { %v1222_v47 = vmax.f32 %v1104_v44, 0.0  ;;  %v1096_v48 = vadd.f32 %v2189_v51, %v1095_v45 }
 0x283   : > { %v1715_v40 = vpop.f32.mrf.mxu0 }
 0x284   : > { %v2195_v50 = vpack.c.bf16 %v1222_v47, %v1221_v46  ;;  %v1220_v0 = vmax.f32 %v1096_v48, 0.0  ;;  %v1117_v54 = vadd.f32 %v1715_v40, %v2189_v51 }
 0x285   : > { %v1108_v52 = vpop.f32.mrf.mxu0 }
 0x286   : > { %v2197_v53 = vpack.c.bf16 %v1220_v0, %v1219_v49  ;;  %v1109_v56 = vadd.f32 %v2189_v51, %v1108_v52  ;;  %v1225_v59 = vmax.f32 %v1117_v54, 0.0 }
 0x287   : > { %v1716_v55 = vpop.f32.mrf.mxu0 }
 0x288   : > { %v1120_v57 = vadd.f32 %v1716_v55, %v2189_v51  ;;  %v1223_v63 = vmax.f32 %v1109_v56, 0.0 }
 0x289   : > { %v1111_v58 = vpop.f32.mrf.mxu0 }
 0x28a   : > { %v1226_v60 = vmax.f32 %v1120_v57, 0.0  ;;  %v1112_v61 = vadd.f32 %v2189_v51, %v1111_v58 }
 0x28b   : > { %v2203_v62 = vpop.f32.mrf.mxu0 }
 0x28c   : > { %v2205_v1 = vpack.c.bf16 %v1226_v60, %v1225_v59  ;;  %v1224_v2 = vmax.f32 %v1112_v61, 0.0 }
 0x28d   : > { %v2207_v3 = vpop.f32.mrf.mxu0 }
 0x28e   : > { %v2209_v5 = vpack.c.bf16 %v1224_v2, %v1223_v63 }
 0x28f   : > { %v1720_v6 = vpop.f32.mrf.mxu0 }
 0x290   : > { %v1136_v63 = vadd.f32 %v1720_v6, %v2189_v51 }
 0x291   : > { %v2211_v7 = vpop.f32.mrf.mxu0 }
 0x292   : > { %v1128_v6 = vadd.f32 %v2189_v51, %v2211_v7 }
 0x293   : > { %v1723_v8 = vpop.f32.mrf.mxu0 }
 0x294   : > { %v1149_v37 = vadd.f32 %v1723_v8, %v2189_v51 }
 0x295   : > { %v1140_v9 = vpop.f32.mrf.mxu0 }
 0x296   : > { %v1233_v42 = vmax.f32 %v1149_v37, 0.0  ;;  %v1141_v0 = vadd.f32 %v2189_v51, %v1140_v9  ;;  %v1133_v9 = vadd.f32 %v2203_v62, %v2189_v51  ;;  %v1125_v62 = vadd.f32 %v2189_v51, %v2207_v3 }
 0x297   : > { %v1724_v10 = vpop.f32.mrf.mxu0 }
 0x298   : > { %v1152_v35 = vadd.f32 %v1724_v10, %v2189_v51  ;;  %v1231_v60 = vmax.f32 %v1141_v0, 0.0 }
 0x299   : > { %v1143_v11 = vpop.f32.mrf.mxu0 }
 0x29a   : > { %v1234_v38 = vmax.f32 %v1152_v35, 0.0  ;;  %v1144_v45 = vadd.f32 %v2189_v51, %v1143_v11  ;;  %v1230_v11 = vmax.f32 %v1136_v63, 0.0 }
 0x29b   : > { %v1727_v12 = vpop.f32.mrf.mxu0 }
 0x29c   : > { %v1165_v15 = vadd.f32 %v1727_v12, %v2189_v51  ;;  %v1259_v47 = vpack.c.bf16 %v1234_v38, %v1233_v42  ;;  %v1232_v56 = vmax.f32 %v1144_v45, 0.0  ;;  %v1291_v38 = vsel %vm432_vm0, %v2205_v1, 0  ;;  %v1272_v42 = vpop.permute.xlu0 %1271 }
 0x29d   : > { %v1156_v14 = vpop.f32.mrf.mxu0  ;;  %v1282_v1 = vsel %vm432_vm0, %v2197_v53, 0 }
 0x29e   : > { %v1157_v17 = vadd.f32 %v2189_v51, %v1156_v14  ;;  %v1237_v20 = vmax.f32 %v1165_v15, 0.0  ;;  %v1303_v59 = vsel %vm432_vm0, %v1259_v47, 0  ;;  %v1258_v2 = vpack.c.bf16 %v1232_v56, %v1231_v60 }
 0x29f   : > { %v1728_v16 = vpop.f32.mrf.mxu0 }
 0x2a0   : > { %v1168_v18 = vadd.f32 %v1728_v16, %v2189_v51  ;;  %v1235_v25 = vmax.f32 %v1157_v17, 0.0  ;;  %v1300_v15 = vsel %vm432_vm0, %v1258_v2, 0  ;;  %v1229_v16 = vmax.f32 %v1133_v9, 0.0 }
 0x2a1   : > { %v1159_v19 = vpop.f32.mrf.mxu0 }
 0x2a2   : > { %v1238_v21 = vmax.f32 %v1168_v18, 0.0  ;;  %v1160_v23 = vadd.f32 %v2189_v51, %v1159_v19  ;;  %v1257_v18 = vpack.c.bf16 %v1230_v11, %v1229_v16 }
 0x2a3   : > { %v2217_v24 = vpop.f32.mrf.mxu0 }
 0x2a4   : > { %v2219_v4 = vpack.c.bf16 %v1238_v21, %v1237_v20  ;;  %v1236_v13 = vmax.f32 %v1160_v23, 0.0  ;;  %v1228_v21 = vmax.f32 %v1128_v6, 0.0 }
 0x2a5   : > { %v2221_v26 = vpop.f32.mrf.mxu0 }
 0x2a6   : > { %v2223_v27 = vpack.c.bf16 %v1236_v13, %v1235_v25  ;;  %v1297_v13 = vsel %vm432_vm0, %v1257_v18, 0 }
 0x2a7   : > { %v1732_v28 = vpop.f32.mrf.mxu0 }
 0x2a8   : > { %v1184_v23 = vadd.f32 %v1732_v28, %v2189_v51  ;;  %v1173_v28 = vadd.f32 %v2189_v51, %v2221_v26 }
 0x2a9   : > { %v2225_v29 = vpop.f32.mrf.mxu0 }
 0x2aa   : > { %v1242_v7 = vmax.f32 %v1184_v23, 0.0  ;;  %v1176_v3 = vadd.f32 %v2189_v51, %v2225_v29  ;;  %v1288_v29 = vsel %vm432_vm0, %v2209_v5, 0  ;;  %v1274_v5 = vlaneseq }
 0x2ab   : > { %v1735_v30 = vpop.f32.mrf.mxu0 }
 0x2ac   : > { %v1197_v61 = vadd.f32 %v1735_v30, %v2189_v51  ;;  %v1227_v30 = vmax.f32 %v1125_v62, 0.0  ;;  %v1240_v37 = vmax.f32 %v1176_v3, 0.0  ;;  %v1275_v26 = vshrl.u32 %v1274_v5, 7 }
 0x2ad   : > { %v1188_v32 = vpop.f32.mrf.mxu0  ;;  %vm1390_vm2 = vcmp.lt.s32.totalorder %v1274_v5, 256 }
 0x2ae   : > { %v1245_v10 = vmax.f32 %v1197_v61, 0.0  ;;  %v1189_v17 = vadd.f32 %v2189_v51, %v1188_v32  ;;  %v1181_v32 = vadd.f32 %v2217_v24, %v2189_v51  ;;  %v1239_v24 = vmax.f32 %v1173_v28, 0.0 }
 0x2af   : > { %v1736_v33 = vpop.f32.mrf.mxu0 }
 0x2b0   : > { %v1200_v57 = vadd.f32 %v1736_v33, %v2189_v51  ;;  %v1243_v20 = vmax.f32 %v1189_v17, 0.0  ;;  %v1256_v33 = vpack.c.bf16 %v1228_v21, %v1227_v30 }
 0x2b1   : > { %v1191_v34 = vpop.f32.mrf.mxu0 }
 0x2b2   : > { %v1246_v8 = vmax.f32 %v1200_v57, 0.0  ;;  %v1192_v14 = vadd.f32 %v2189_v51, %v1191_v34  ;;  %v1241_v34 = vmax.f32 %v1181_v32, 0.0 }
 0x2b3   : > { %v1739_v36 = vpop.f32.mrf.mxu0 }
 0x2b4   : > { %v1213_v39 = vadd.f32 %v1739_v36, %v2189_v51  ;;  %v1265_v12 = vpack.c.bf16 %v1246_v8, %v1245_v10  ;;  %v1244_v19 = vmax.f32 %v1192_v14, 0.0  ;;  %v1263_v35 = vpack.c.bf16 %v1242_v7, %v1241_v34 }
 0x2b5   : > { %v1204_v31 = vpop.f32.mrf.mxu0  ;;  %v1294_v36 = vsel %vm432_vm0, %v1256_v33, 0 }
 0x2b6   : > { %v1205_v43 = vadd.f32 %v2189_v51, %v1204_v31  ;;  %v1249_v48 = vmax.f32 %v1213_v39, 0.0  ;;  %v1264_v25 = vpack.c.bf16 %v1244_v19, %v1243_v20  ;;  %v1262_v31 = vpack.c.bf16 %v1240_v37, %v1239_v24 }
 0x2b7   : > { %v1740_v41 = vpop.f32.mrf.mxu0  ;;  %v1276_v39 = vsub.s32 0, %v1275_v26 }
 0x2b8   : > { %v1216_v44 = vadd.f32 %v1740_v41, %v2189_v51  ;;  %v1247_v52 = vmax.f32 %v1205_v43, 0.0  ;;  %v1871_v41 = vmov 1966171168  }
 0x2b9   : > { %v1207_v46 = vpop.f32.mrf.mxu0  ;;  %v1277_v43 = vrot.slane %v1272_v42, %v1276_v39 }
 0x2ba   : > { %v1250_v40 = vmax.f32 %v1216_v44, 0.0  ;;  %v1208_v49 = vadd.f32 %v2189_v51, %v1207_v46  ;;  %v1285_v51 = vsel %vm432_vm0, %v2195_v50, 0 }
 0x2bc   : > { %v1267_v54 = vpack.c.bf16 %v1250_v40, %v1249_v48  ;;  %v1248_v55 = vmax.f32 %v1208_v49, 0.0 }
 0x2be   : > { %v1266_v58 = vpack.c.bf16 %v1248_v55, %v1247_v52  ;;  %1745 = vmatprep.subr.msk.bf16.mxu1 %vm432_vm0, %v1267_v54 }
 0x2bf   : > { %1600 = vmatpush3.bf16.xpose.msra.mxu1 %v1303_v59 }
 0x2c0   : > { %1746 = vmatprep.subr.msk.bf16.mxu1 %vm432_vm0, %v1266_v58 }
 0x2c7   : > { %1602 = vmatpush3.bf16.xpose.msra.mxu1 %v1300_v15 }
 0x2c8   : > { %1747 = vmatprep.subr.msk.bf16.mxu1 %vm432_vm0, %v1265_v12 }
 0x2cf   : > { %1604 = vmatpush3.bf16.xpose.msra.mxu1 %v1297_v13 }
 0x2d0   : > { %1748 = vmatprep.subr.msk.bf16.mxu1 %vm432_vm0, %v1264_v25 }
 0x2d7   : > { %1606 = vmatpush3.bf16.xpose.msra.mxu1 %v1294_v36 }
 0x2d8   : > { %1749 = vmatprep.subr.msk.bf16.mxu1 %vm432_vm0, %v1263_v35 }
 0x2df   : > { %1608 = vmatpush3.bf16.xpose.msra.mxu1 %v1291_v38 }
 0x2e0   : > { %1750 = vmatprep.subr.msk.bf16.mxu1 %vm432_vm0, %v1262_v31 }
 0x2e7   : > { %1610 = vmatpush3.bf16.xpose.msra.mxu1 %v1288_v29 }
 0x2e8   : > { %1751 = vmatprep.subr.msk.bf16.mxu1 %vm432_vm0, %v2219_v4  ;;  %v1374_v4 = vunpack.c.l.s4 %v1871_v41 }
 0x2ea   : > { %v1375_v50 = vunpack.c.0.s8 %v1374_v4 }
 0x2ec   : > { %v1378_v47 = vsub.s32 %v1375_v50, %v1275_v26 }
 0x2ef   : > { %1612 = vmatpush3.bf16.xpose.msra.mxu1 %v1285_v51 }
 0x2f0   : > { %1752 = vmatprep.subr.msk.bf16.mxu1 %vm432_vm0, %v2223_v27 }
 0x2f7   : > { %1614 = vmatpush3.bf16.xpose.msra.mxu1 %v1282_v1 }
 0x2fe   : > { %1616 = vmatmul.mubr.msk.bf16.vlgmr.msra.gmra.mxu1 %vm432_vm0, %v2182_v22 }
 0x3be   : > { %v1363_v44 = vpop.f32.mrf.mxu1 }
 0x3bf   : > { %v1364_v46 = vadd.f32 %v1363_v44, %v1277_v43 }
 0x3c0   : > { %v1365_v45 = vpop.f32.mrf.mxu1 }
 0x3c1   : > { %v1366_v27 = vadd.f32 %v1365_v45, %v1277_v43 }
 0x3c2   : > { %v1367_v48 = vpop.f32.mrf.mxu1 }
 0x3c3   : > { %v1372_v53 = vcombine.low %v1364_v46, %v1366_v27 }
 0x3c4   : > { %v1368_v40 = vpop.f32.mrf.mxu1 }
 0x3c5   : > { %v1379_v49 = vrot.slane %v1372_v53, %v1378_v47  ;;  %1400 = sbr.rel (!%p1964_p5) target bundleno = 996 (0x3e4), region = 60 }
 0x3c7   : > { %v1386_v22 = vrot.slane %v1379_v49, %v1378_v47 }
 0x3c9   : > { %1392 = vst.msk [vmem:[%s340_s30] sm:$0x3] %vm1390_vm2, %v1386_v22 }
 0x3ca   : > { %s2342_s18 = smov (!%p1403_p11, %s1402_s18), 2 }
 0x3cb   : > { %s2283_s22 = sshll.u32 %s2342_s18, 4 }
 0x3cc   : > { %s1407_s17 = ssub.s32 32, %s2283_s22 }
 0x3cd   : > { %1408 = vsyncadd %s2278_s10, %s1407_s17  ;;  %p1532_p12 = scmp.ne.s32.totalorder %s2283_s22, 0  ;;  %s1411_s20 = scalar_lea.hbm %s2334_s9, %s1978_s24 }
 0x3ce   : > { %s1413_s26 = sshll.u32 %s340_s30, 4  ;;  %s1872_s27 = smov [#allocation3]   ;;  %s1414_s26 = int_to_ptr.vmem [resolvable:$true] %s1413_s26 }
 0x3cf   : > { %s1808_s8 = scalar_lea.vmem %s1414_s26, %s2283_s22  ;;  %s1812_s28 = sshll.u32 %s1872_s27, 4  ;;  %s1813_s28 = int_to_ptr.vmem [resolvable:$false] %s1812_s28 }
 0x3d0   : > { %p1809_p13 = scmp.ne.s32.totalorder %s1414_s26, %s1808_s8  ;;  %s1814_s29 = scalar_lea.vmem %s1813_s28, 64 }
 0x3d1   : > { %p1815_p2 = scmp.lt.s32.totalorder %s1414_s26, %s1813_s28  ;;  %p1816_p3 = scmp.lt.s32.totalorder %s1814_s29, %s1808_s8 }
 0x3d2   : > { %p1810_p0 = pnand %p1809_p13, %p1532_p12 }
 0x3d3   : > { %p1817_p4 = por %p1816_p3, %p1815_p2 }
 0x3d4   : > { %p1811_p1 = pneg %p1810_p0 }
 0x3d6   : > { %p1818_p5 = pnand %p1817_p4, %p1811_p1 }
 0x3d8   : > { %1821 = shalt.err (!%p1818_p5)
}
 0x3d9   : > { %s1822_s15 = scalar_lea.hbm %s1411_s20, %s2283_s22  ;;  %s1826_s18 = scalar_lea.hbm %s2334_s9, 48 }
 0x3da   : > { %p1823_p7 = scmp.ne.s32.totalorder %s1411_s20, %s1822_s15  ;;  %p1827_p10 = scmp.lt.s32.totalorder %s1411_s20, %s2334_s9 }
 0x3db   : > { %p1828_p11 = scmp.lt.s32.totalorder %s1826_s18, %s1822_s15 }
 0x3dc   : > { %p1824_p8 = pnand %p1823_p7, %p1532_p12 }
 0x3dd   : > { %p1829_p13 = por %p1828_p11, %p1827_p10 }
 0x3de   : > { %p1825_p9 = pneg %p1824_p8 }
 0x3e0   : > { %p1830_p0 = pnand %p1829_p13, %p1825_p9 }
 0x3e2   : > { %1833 = shalt.err (!%p1830_p0)
}
 0x3e3   : > { %1416 = dma.vmem_to_hbm [thread:$0]  (%p1532_p12), %s1414_s26, %s2283_s22, %s1411_s20, %s2278_s10  }
 0x3e4 PF: > { %p1758_p1 = scmp.ge.s32.totalorder %s1868_s14, 2  ;;  %s1425_s25 = sand.u32 1, %s1856_s11  }
 0x3e5   : > { %s1426_s8 = scalar_lea.sflag [#allocation4], %s1425_s25 }
 0x3e6   : > { %p1755_p2 = pnand %p1758_p1, %p1968_p6 }
 0x3e8   : > { %p1756_p3 = pneg %p1755_p2 }
 0x3ea   : > { %1851 = dma.done.wait (%p1756_p3), %s1426_s8, 32  }
 0x3eb   : > { %1853 = vsyncadd (%p1756_p3), %s1426_s8, 4294967264  ;;  %p21_p4 = scmp.ge.s32.totalorder %s1951_s16, 4   ;;  %s2337_s11 = smov %s1860_s12 }
 0x3ec   : > { %s2338_s12 = smov %s1864_s13  ;;  %s2339_s13 = smov %s1962_s19 }
 0x3ed   : > { %s2340_s14 = smov %s1951_s16  ;;  %23 = sbr.rel (!%p21_p4) target bundleno = 6 (0x6), region = 91 }
 0x3f2   :  { %1431 = vsyncpa [#allocation4], 1 }
 0x3f3   :  { %1433 = vsyncpa [#allocation4 + $0x1], 1 }

</bundles_post_ra>
